<compile_context>
chip_gen: v5e
topology: v5e:2x2
jax: 0.10.0
libtpu: 0.0.40
codegen_flags: <defaults>
</compile_context>

<pallas_src>
import functools

import jax
import jax.numpy as jnp
from jax.experimental import pallas as pl
from jax.experimental.pallas import tpu as pltpu


def _round_up(a, b):
    return ((a + b - 1) // b) * b


def _cdiv(a, b):
    return (a + b - 1) // b


def attention_block_kernel(g_ref, x_ref, wg_ref, bg_ref, wx_ref, bx_ref,
                           wpsi_ref, bpsi_ref, out_ref, *, use_mxu, f_g, f_l):
    # g_ref: (F_g, tm), x_ref: (F_l, tm) -- channels on sublanes, pixels on
    # lanes, read in their native (possibly bf16) dtype.
    if use_mxu:
        # Fused 1x1 conv + BN: (F_int, C) @ (C, tm) -> (F_int, tm), f32 acc.
        # bf16 activations x bf16 weights -> native single-pass MXU mode.
        pre = (jnp.dot(wg_ref[...], g_ref[...],
                       preferred_element_type=jnp.float32) + bg_ref[...]
               + jnp.dot(wx_ref[...], x_ref[...],
                         preferred_element_type=jnp.float32) + bx_ref[...])
    else:
        # Tiny channel counts: a (<=8, <=8) matmul wastes MXU drain latency;
        # do the projections as unrolled broadcast-FMA on the VPU instead.
        pre = bg_ref[...] + bx_ref[...]                       # (F_int, 1)
        for c in range(f_g):
            pre = pre + (wg_ref[:, c:c + 1].astype(jnp.float32)
                         * g_ref[c:c + 1, :].astype(jnp.float32))
        for c in range(f_l):
            pre = pre + (wx_ref[:, c:c + 1].astype(jnp.float32)
                         * x_ref[c:c + 1, :].astype(jnp.float32))

    p = jnp.maximum(pre, 0.0)                                 # ReLU, (F_int, tm)

    # psi projection: K=F_int, one output channel -> broadcast-FMA + sublane
    # reduce (VPU/XLU) rather than a 1-lane-wide MXU matmul.
    psi = jnp.sum(p * wpsi_ref[...], axis=0, keepdims=True) + bpsi_ref[0]
    psi = jax.nn.sigmoid(psi)                                 # (1, tm)

    # Re-read x in native dtype (no live f32 tile copy held across the body).
    out_ref[...] = (x_ref[...] * psi).astype(out_ref.dtype)


def attention_block(g, x, params, *, tm=None, out_dtype=None, use_mxu=None,
                    target_step_bytes=4 << 20):
    """g: (N, F_g, H, W), x: (N, F_l, H, W), NCHW (PyTorch convention).

    Inputs are consumed in their own dtype (pass bf16 inputs for half the HBM
    read traffic and native bf16 MXU passes); output dtype defaults to x.dtype.
    """
    N, F_g, H, W = g.shape
    _, F_l, _, _ = x.shape
    F_int = params["wg_t"].shape[0]
    HW = H * W

    act_dtype = jnp.dtype(x.dtype)
    out_dtype = jnp.dtype(out_dtype) if out_dtype is not None else act_dtype
    if use_mxu is None:
        use_mxu = (F_int > 8) or (F_g > 8) or (F_l > 8)

    # Matmul weights match the activation dtype when bf16 (native MXU mode,
    # accumulation stays f32); biases / psi column stay f32.
    w_dtype = jnp.dtype(act_dtype if act_dtype == jnp.bfloat16 else jnp.float32)
    wg_t = params["wg_t"].astype(w_dtype)
    wx_t = params["wx_t"].astype(w_dtype)

    # Free view: NCHW -> (N, C, H*W). No transpose, no pad, no cast.
    g3 = g.reshape(N, F_g, HW)
    x3 = x.reshape(N, F_l, HW)

    # Lane tile: scale with channel count so each grid step moves a few MiB
    # of HBM (near-roofline on every generation without blowing VMEM at real
    # RAUNet channel counts on v7x's 64 MiB).
    itemsize = act_dtype.itemsize
    bytes_per_lane = (F_g + F_l) * itemsize + F_l * out_dtype.itemsize
    if tm is None:
        tm = _round_up(max(1, target_step_bytes // max(1, bytes_per_lane)), 128)
        tm = min(max(tm, 1024), 16384)
    tm_eff = min(_round_up(tm, 128), _round_up(HW, 128))

    # v7x has 2 TensorCores: guarantee >=2 parallel grid steps even when N==1
    # and the whole image fits in one tile.
    if N * _cdiv(HW, tm_eff) < 2 and HW > 128:
        tm_eff = max(128, _round_up(_cdiv(HW, 2), 128))

    grid = (N, _cdiv(HW, tm_eff))   # no jnp.pad: Pallas masks boundary blocks
                                    # (safe: psi/out are strictly per-lane)

    # Explicit scoped-VMEM budget (defaults are only 16/32/32 MiB on v5e/v6e/v7x).
    blocks = 2 * ((F_g + F_l) * itemsize + F_l * out_dtype.itemsize) * tm_eff
    interm = 4 * F_int * tm_eff * 4
    weights = 2 * (F_int * (F_g + F_l) * w_dtype.itemsize + 4 * F_int * 4)
    vmem_limit = int(min(max(32 << 20, 2 * (blocks + interm + weights) + (2 << 20)),
                         48 << 20))

    def pix_spec(C):
        return pl.BlockSpec((None, C, tm_eff), lambda n, i: (n, 0, i))

    def full_spec(shape):
        return pl.BlockSpec(shape, lambda n, i: (0, 0))

    kernel = functools.partial(attention_block_kernel,
                               use_mxu=use_mxu, f_g=F_g, f_l=F_l)

    out3 = pl.pallas_call(
        kernel,
        out_shape=jax.ShapeDtypeStruct((N, F_l, HW), out_dtype),
        grid_spec=pltpu.PrefetchScalarGridSpec(
            num_scalar_prefetch=0,
            grid=grid,
            in_specs=[
                pix_spec(F_g),                          # g tile  (F_g, tm)
                pix_spec(F_l),                          # x tile  (F_l, tm)
                full_spec((F_int, F_g)),                # fused W_g^T
                full_spec((F_int, 1)),                  # fused W_g bias column
                full_spec((F_int, F_l)),                # fused W_x^T
                full_spec((F_int, 1)),                  # fused W_x bias column
                full_spec((F_int, 1)),                  # fused psi weight column
                pl.BlockSpec(memory_space=pltpu.MemorySpace.SMEM),  # psi bias
            ],
            out_specs=pix_spec(F_l),
        ),
        compiler_params=pltpu.CompilerParams(
            dimension_semantics=("parallel", "parallel"),
            vmem_limit_bytes=vmem_limit),
    )(g3, x3, wg_t, params["bg"], wx_t, params["bx"],
      params["wpsi"], params["bpsi"])

    return out3.reshape(N, F_l, H, W)


def _fold_bn_t(conv_w, conv_b, gamma, beta, mean, var, eps=1e-5):
    """Fold inference-mode BatchNorm into a 1x1 conv.
    conv_w: (C_in, C_out). Returns transposed fused weight (C_out, C_in) and a
    bias column (C_out, 1) for the channels-on-sublanes kernel layout."""
    s = gamma / jnp.sqrt(var + eps)                    # (C_out,)
    w_t = (conv_w * s[None, :]).T                      # (C_out, C_in)
    b = conv_b * s + (beta - mean * s)                 # (C_out,)
    return w_t.astype(jnp.float32), b.reshape(-1, 1).astype(jnp.float32)


def make_params(key, F_g, F_l, F_int):
    ks = jax.random.split(key, 11)
    # Conv2d 1x1 weights stored as (C_in, C_out) matmul weights.
    wg_conv = jax.random.normal(ks[0], (F_g, F_int), jnp.float32) * 0.1
    bg_conv = jax.random.normal(ks[1], (F_int,), jnp.float32) * 0.1
    wx_conv = jax.random.normal(ks[2], (F_l, F_int), jnp.float32) * 0.1
    bx_conv = jax.random.normal(ks[3], (F_int,), jnp.float32) * 0.1
    wp_conv = jax.random.normal(ks[4], (F_int, 1), jnp.float32) * 0.1
    bp_conv = jax.random.normal(ks[5], (1,), jnp.float32) * 0.1
    # BatchNorm params (inference mode): gamma, beta, running_mean, running_var.
    bn_g = (jnp.ones((F_int,)) + 0.1 * jax.random.normal(ks[6], (F_int,)),
            0.1 * jax.random.normal(ks[7], (F_int,)),
            0.1 * jax.random.normal(ks[8], (F_int,)),
            jnp.ones((F_int,)) * 1.2)
    bn_x = (jnp.ones((F_int,)) + 0.1 * jax.random.normal(ks[9], (F_int,)),
            0.1 * jax.random.normal(ks[10], (F_int,)),
            0.05 * jnp.ones((F_int,)),
            jnp.ones((F_int,)) * 0.9)
    bn_p = (jnp.ones((1,)) * 1.1, jnp.ones((1,)) * 0.02,
            jnp.ones((1,)) * 0.01, jnp.ones((1,)) * 1.05)

    wg_t, bg = _fold_bn_t(wg_conv, bg_conv, *bn_g)     # (F_int, F_g), (F_int, 1)
    wx_t, bx = _fold_bn_t(wx_conv, bx_conv, *bn_x)     # (F_int, F_l), (F_int, 1)
    wp_t, bp = _fold_bn_t(wp_conv, bp_conv, *bn_p)     # (1, F_int), (1, 1)
    return {
        "wg_t": wg_t, "bg": bg,
        "wx_t": wx_t, "bx": bx,
        "wpsi": wp_t.T,                                # (F_int, 1) column
        "bpsi": bp.reshape(1),                         # (1,) scalar for SMEM
    }


def attention_block_ref(g, x, p):
    """Pure-JAX reference of the same math (for a correctness check)."""
    N, F_g, H, W = g.shape
    F_l = x.shape[1]
    g3 = g.reshape(N, F_g, -1).astype(jnp.float32)
    x3 = x.reshape(N, F_l, -1).astype(jnp.float32)
    g1 = jnp.einsum("of,nfm->nom", p["wg_t"], g3,
                    precision="highest") + p["bg"][None, :, :]
    x1 = jnp.einsum("ol,nlm->nom", p["wx_t"], x3,
                    precision="highest") + p["bx"][None, :, :]
    pre = jnp.maximum(g1 + x1, 0.0)
    psi_pre = jnp.einsum("nfm,fo->nom", pre, p["wpsi"],
                         precision="highest") + p["bpsi"][0]
    psi = jax.nn.sigmoid(psi_pre)                      # (N, 1, HW)
    out = x3 * psi
    return out.reshape(N, F_l, H, W)


if __name__ == "__main__":
    key = jax.random.PRNGKey(0)
    k_g, k_x, k_p, k_g2, k_x2, k_p2 = jax.random.split(key, 6)

    # 1) Small shapes consistent with the module (VPU small-channel path).
    N, F_g, F_l, F_int, H, Wd = 2, 4, 4, 8, 16, 16
    g = jax.random.normal(k_g, (N, F_g, H, Wd), jnp.float32)
    x = jax.random.normal(k_x, (N, F_l, H, Wd), jnp.float32)
    params = make_params(k_p, F_g, F_l, F_int)
    ref = attention_block_ref(g, x, params)

    out = jax.block_until_ready(attention_block(g, x, params))
    assert out.shape == (N, F_l, H, Wd)
    assert jnp.allclose(out, ref, atol=1e-5, rtol=1e-5)

    # 2) bf16 producer path: inputs already bf16 -> bf16 reads, bf16 weights,
    #    bf16 output; no extra pre-kernel cast pass. Kernel accumulates f32.
    out_bf16 = jax.block_until_ready(
        attention_block(g.astype(jnp.bfloat16), x.astype(jnp.bfloat16), params))
    assert out_bf16.dtype == jnp.bfloat16
    assert jnp.allclose(out_bf16.astype(jnp.float32), ref, atol=1e-1, rtol=1e-1)

    # 3) Larger channels (MXU path) + N=1 (megacore tile split) + HW not a
    #    multiple of the tile (boundary-block masking, no explicit pad).
    N2, F_g2, F_l2, F_int2, H2, W2 = 1, 16, 16, 32, 12, 12
    g2 = jax.random.normal(k_g2, (N2, F_g2, H2, W2), jnp.float32)
    x2 = jax.random.normal(k_x2, (N2, F_l2, H2, W2), jnp.float32)
    params2 = make_params(k_p2, F_g2, F_l2, F_int2)
    ref2 = attention_block_ref(g2, x2, params2)
    out2 = jax.block_until_ready(attention_block(g2, x2, params2))
    assert out2.shape == (N2, F_l2, H2, W2)
    assert jnp.allclose(out2, ref2, atol=2e-3, rtol=2e-3)

    # TODO(synk): training-mode BatchNorm (batch statistics) is not implemented;
    # the kernel folds inference-mode running stats into the 1x1 convs.
    print("KERNEL_OK")
</pallas_src>

<mosaic_0001>
module attributes {stable_mosaic.version = 11 : i64} {
  func.func @attention_block_kernel(%arg0: i32, %arg1: i32, %arg2: memref<1x4x256xf32, #tpu.memory_space<vmem>>, %arg3: memref<1x4x256xf32, #tpu.memory_space<vmem>>, %arg4: memref<8x4xf32, #tpu.memory_space<vmem>>, %arg5: memref<8x1xf32, #tpu.memory_space<vmem>>, %arg6: memref<8x4xf32, #tpu.memory_space<vmem>>, %arg7: memref<8x1xf32, #tpu.memory_space<vmem>>, %arg8: memref<8x1xf32, #tpu.memory_space<vmem>>, %arg9: memref<1xf32, #tpu.memory_space<smem>>, %arg10: memref<1x4x256xf32, #tpu.memory_space<vmem>>) attributes {dimension_semantics = [#tpu.dimension_semantics<parallel>, #tpu.dimension_semantics<parallel>], iteration_bounds = array<i64: 2, 1>, scalar_prefetch = 0 : i64, scratch_operands = 0 : i64, tpu.core_type = #tpu.core_type<tc>, window_params = [{transform_indices = @transform_0, window_bounds = array<i64: 1, 4, 256>}, {transform_indices = @transform_1, window_bounds = array<i64: 1, 4, 256>}, {pipeline_mode = #tpu.pipeline_mode<synchronous>, transform_indices = @transform_2, window_bounds = array<i64: 8, 4>}, {pipeline_mode = #tpu.pipeline_mode<synchronous>, transform_indices = @transform_3, window_bounds = array<i64: 8, 1>}, {pipeline_mode = #tpu.pipeline_mode<synchronous>, transform_indices = @transform_4, window_bounds = array<i64: 8, 4>}, {pipeline_mode = #tpu.pipeline_mode<synchronous>, transform_indices = @transform_5, window_bounds = array<i64: 8, 1>}, {pipeline_mode = #tpu.pipeline_mode<synchronous>, transform_indices = @transform_6, window_bounds = array<i64: 8, 1>}, {transform_indices = @transform_7, window_bounds = array<i64: 1>}, {transform_indices = @transform_8, window_bounds = array<i64: 1, 4, 256>}]} {
    %c0 = arith.constant 0 : index
    %c0_0 = arith.constant 0 : index
    %0 = vector.load %arg5[%c0, %c0_0] : memref<8x1xf32, #tpu.memory_space<vmem>>, vector<8x1xf32>
    %c0_1 = arith.constant 0 : index
    %c0_2 = arith.constant 0 : index
    %1 = vector.load %arg7[%c0_1, %c0_2] : memref<8x1xf32, #tpu.memory_space<vmem>>, vector<8x1xf32>
    %2 = arith.addf %0, %1 : vector<8x1xf32>
    %c0_3 = arith.constant 0 : index
    %c0_4 = arith.constant 0 : index
    %3 = vector.load %arg4[%c0_3, %c0_4] : memref<8x4xf32, #tpu.memory_space<vmem>>, vector<8x1xf32>
    %c0_5 = arith.constant 0 : index
    %c0_6 = arith.constant 0 : index
    %c0_7 = arith.constant 0 : index
    %4 = vector.load %arg2[%c0_5, %c0_6, %c0_7] : memref<1x4x256xf32, #tpu.memory_space<vmem>>, vector<1x1x256xf32>
    %5 = vector.shape_cast %4 : vector<1x1x256xf32> to vector<1x256xf32>
    %6 = vector.broadcast %3 : vector<8x1xf32> to vector<8x256xf32>
    %7 = vector.broadcast %5 : vector<1x256xf32> to vector<8x256xf32>
    %8 = arith.mulf %6, %7 : vector<8x256xf32>
    %9 = vector.broadcast %2 : vector<8x1xf32> to vector<8x256xf32>
    %10 = arith.addf %9, %8 : vector<8x256xf32>
    %c0_8 = arith.constant 0 : index
    %c1 = arith.constant 1 : index
    %11 = vector.load %arg4[%c0_8, %c1] : memref<8x4xf32, #tpu.memory_space<vmem>>, vector<8x1xf32>
    %c0_9 = arith.constant 0 : index
    %c1_10 = arith.constant 1 : index
    %c0_11 = arith.constant 0 : index
    %12 = vector.load %arg2[%c0_9, %c1_10, %c0_11] : memref<1x4x256xf32, #tpu.memory_space<vmem>>, vector<1x1x256xf32>
    %13 = vector.shape_cast %12 : vector<1x1x256xf32> to vector<1x256xf32>
    %14 = vector.broadcast %11 : vector<8x1xf32> to vector<8x256xf32>
    %15 = vector.broadcast %13 : vector<1x256xf32> to vector<8x256xf32>
    %16 = arith.mulf %14, %15 : vector<8x256xf32>
    %17 = arith.addf %10, %16 : vector<8x256xf32>
    %c0_12 = arith.constant 0 : index
    %c2 = arith.constant 2 : index
    %18 = vector.load %arg4[%c0_12, %c2] : memref<8x4xf32, #tpu.memory_space<vmem>>, vector<8x1xf32>
    %c0_13 = arith.constant 0 : index
    %c2_14 = arith.constant 2 : index
    %c0_15 = arith.constant 0 : index
    %19 = vector.load %arg2[%c0_13, %c2_14, %c0_15] : memref<1x4x256xf32, #tpu.memory_space<vmem>>, vector<1x1x256xf32>
    %20 = vector.shape_cast %19 : vector<1x1x256xf32> to vector<1x256xf32>
    %21 = vector.broadcast %18 : vector<8x1xf32> to vector<8x256xf32>
    %22 = vector.broadcast %20 : vector<1x256xf32> to vector<8x256xf32>
    %23 = arith.mulf %21, %22 : vector<8x256xf32>
    %24 = arith.addf %17, %23 : vector<8x256xf32>
    %c0_16 = arith.constant 0 : index
    %c3 = arith.constant 3 : index
    %25 = vector.load %arg4[%c0_16, %c3] : memref<8x4xf32, #tpu.memory_space<vmem>>, vector<8x1xf32>
    %c0_17 = arith.constant 0 : index
    %c3_18 = arith.constant 3 : index
    %c0_19 = arith.constant 0 : index
    %26 = vector.load %arg2[%c0_17, %c3_18, %c0_19] : memref<1x4x256xf32, #tpu.memory_space<vmem>>, vector<1x1x256xf32>
    %27 = vector.shape_cast %26 : vector<1x1x256xf32> to vector<1x256xf32>
    %28 = vector.broadcast %25 : vector<8x1xf32> to vector<8x256xf32>
    %29 = vector.broadcast %27 : vector<1x256xf32> to vector<8x256xf32>
    %30 = arith.mulf %28, %29 : vector<8x256xf32>
    %31 = arith.addf %24, %30 : vector<8x256xf32>
    %c0_20 = arith.constant 0 : index
    %c0_21 = arith.constant 0 : index
    %32 = vector.load %arg6[%c0_20, %c0_21] : memref<8x4xf32, #tpu.memory_space<vmem>>, vector<8x1xf32>
    %c0_22 = arith.constant 0 : index
    %c0_23 = arith.constant 0 : index
    %c0_24 = arith.constant 0 : index
    %33 = vector.load %arg3[%c0_22, %c0_23, %c0_24] : memref<1x4x256xf32, #tpu.memory_space<vmem>>, vector<1x1x256xf32>
    %34 = vector.shape_cast %33 : vector<1x1x256xf32> to vector<1x256xf32>
    %35 = vector.broadcast %32 : vector<8x1xf32> to vector<8x256xf32>
    %36 = vector.broadcast %34 : vector<1x256xf32> to vector<8x256xf32>
    %37 = arith.mulf %35, %36 : vector<8x256xf32>
    %38 = arith.addf %31, %37 : vector<8x256xf32>
    %c0_25 = arith.constant 0 : index
    %c1_26 = arith.constant 1 : index
    %39 = vector.load %arg6[%c0_25, %c1_26] : memref<8x4xf32, #tpu.memory_space<vmem>>, vector<8x1xf32>
    %c0_27 = arith.constant 0 : index
    %c1_28 = arith.constant 1 : index
    %c0_29 = arith.constant 0 : index
    %40 = vector.load %arg3[%c0_27, %c1_28, %c0_29] : memref<1x4x256xf32, #tpu.memory_space<vmem>>, vector<1x1x256xf32>
    %41 = vector.shape_cast %40 : vector<1x1x256xf32> to vector<1x256xf32>
    %42 = vector.broadcast %39 : vector<8x1xf32> to vector<8x256xf32>
    %43 = vector.broadcast %41 : vector<1x256xf32> to vector<8x256xf32>
    %44 = arith.mulf %42, %43 : vector<8x256xf32>
    %45 = arith.addf %38, %44 : vector<8x256xf32>
    %c0_30 = arith.constant 0 : index
    %c2_31 = arith.constant 2 : index
    %46 = vector.load %arg6[%c0_30, %c2_31] : memref<8x4xf32, #tpu.memory_space<vmem>>, vector<8x1xf32>
    %c0_32 = arith.constant 0 : index
    %c2_33 = arith.constant 2 : index
    %c0_34 = arith.constant 0 : index
    %47 = vector.load %arg3[%c0_32, %c2_33, %c0_34] : memref<1x4x256xf32, #tpu.memory_space<vmem>>, vector<1x1x256xf32>
    %48 = vector.shape_cast %47 : vector<1x1x256xf32> to vector<1x256xf32>
    %49 = vector.broadcast %46 : vector<8x1xf32> to vector<8x256xf32>
    %50 = vector.broadcast %48 : vector<1x256xf32> to vector<8x256xf32>
    %51 = arith.mulf %49, %50 : vector<8x256xf32>
    %52 = arith.addf %45, %51 : vector<8x256xf32>
    %c0_35 = arith.constant 0 : index
    %c3_36 = arith.constant 3 : index
    %53 = vector.load %arg6[%c0_35, %c3_36] : memref<8x4xf32, #tpu.memory_space<vmem>>, vector<8x1xf32>
    %c0_37 = arith.constant 0 : index
    %c3_38 = arith.constant 3 : index
    %c0_39 = arith.constant 0 : index
    %54 = vector.load %arg3[%c0_37, %c3_38, %c0_39] : memref<1x4x256xf32, #tpu.memory_space<vmem>>, vector<1x1x256xf32>
    %55 = vector.shape_cast %54 : vector<1x1x256xf32> to vector<1x256xf32>
    %56 = vector.broadcast %53 : vector<8x1xf32> to vector<8x256xf32>
    %57 = vector.broadcast %55 : vector<1x256xf32> to vector<8x256xf32>
    %58 = arith.mulf %56, %57 : vector<8x256xf32>
    %59 = arith.addf %52, %58 : vector<8x256xf32>
    %cst = arith.constant 0.000000e+00 : f32
    %60 = vector.broadcast %cst : f32 to vector<8x256xf32>
    %61 = arith.maximumf %59, %60 : vector<8x256xf32>
    %c0_40 = arith.constant 0 : index
    %c0_41 = arith.constant 0 : index
    %62 = vector.load %arg8[%c0_40, %c0_41] : memref<8x1xf32, #tpu.memory_space<vmem>>, vector<8x1xf32>
    %63 = vector.broadcast %62 : vector<8x1xf32> to vector<8x256xf32>
    %64 = arith.mulf %61, %63 : vector<8x256xf32>
    %cst_42 = arith.constant dense<0.000000e+00> : vector<256xf32>
    %65 = vector.multi_reduction <add>, %64, %cst_42 [0] : vector<8x256xf32> to vector<256xf32>
    %66 = vector.shape_cast %65 : vector<256xf32> to vector<1x256xf32>
    %c0_43 = arith.constant 0 : index
    %67 = memref.load %arg9[%c0_43] : memref<1xf32, #tpu.memory_space<smem>>
    %68 = vector.broadcast %67 : f32 to vector<1x256xf32>
    %69 = arith.addf %66, %68 : vector<1x256xf32>
    %70 = arith.negf %69 : vector<1x256xf32>
    %71 = math.exp %70 : vector<1x256xf32>
    %cst_44 = arith.constant 1.000000e+00 : f32
    %72 = vector.broadcast %cst_44 : f32 to vector<1x256xf32>
    %73 = arith.addf %72, %71 : vector<1x256xf32>
    %74 = arith.divf %72, %73 : vector<1x256xf32>
    %c0_45 = arith.constant 0 : index
    %c0_46 = arith.constant 0 : index
    %c0_47 = arith.constant 0 : index
    %75 = vector.load %arg3[%c0_45, %c0_46, %c0_47] : memref<1x4x256xf32, #tpu.memory_space<vmem>>, vector<1x4x256xf32>
    %76 = vector.shape_cast %75 : vector<1x4x256xf32> to vector<4x256xf32>
    %77 = vector.broadcast %74 : vector<1x256xf32> to vector<4x256xf32>
    %78 = arith.mulf %76, %77 : vector<4x256xf32>
    %c0_48 = arith.constant 0 : index
    %c0_49 = arith.constant 0 : index
    %c0_50 = arith.constant 0 : index
    %79 = vector.load %arg10[%c0_48, %c0_49, %c0_50] : memref<1x4x256xf32, #tpu.memory_space<vmem>>, vector<1x4x256xf32>
    %80 = vector.shape_cast %79 : vector<1x4x256xf32> to vector<4x256xf32>
    %81 = vector.shape_cast %78 : vector<4x256xf32> to vector<1x4x256xf32>
    tpu.vector_store %arg10[%c0_48, %c0_49, %c0_50], %81 {strides = array<i32>} : memref<1x4x256xf32, #tpu.memory_space<vmem>>, vector<1x4x256xf32>,
    return
  }
  func.func @transform_0(%arg0: i32, %arg1: i32) -> (i32, i32, i32) {
    %c0_i32 = arith.constant 0 : i32
    %c0_i32_0 = arith.constant 0 : i32
    return %arg0, %c0_i32, %arg1 : i32, i32, i32
  }
  func.func @transform_1(%arg0: i32, %arg1: i32) -> (i32, i32, i32) {
    %c0_i32 = arith.constant 0 : i32
    %c0_i32_0 = arith.constant 0 : i32
    return %arg0, %c0_i32, %arg1 : i32, i32, i32
  }
  func.func @transform_2(%arg0: i32, %arg1: i32) -> (i32, i32) {
    %c0_i32 = arith.constant 0 : i32
    %c0_i32_0 = arith.constant 0 : i32
    %c0_i32_1 = arith.constant 0 : i32
    return %c0_i32, %c0_i32_0 : i32, i32
  }
  func.func @transform_3(%arg0: i32, %arg1: i32) -> (i32, i32) {
    %c0_i32 = arith.constant 0 : i32
    %c0_i32_0 = arith.constant 0 : i32
    %c0_i32_1 = arith.constant 0 : i32
    return %c0_i32, %c0_i32_0 : i32, i32
  }
  func.func @transform_4(%arg0: i32, %arg1: i32) -> (i32, i32) {
    %c0_i32 = arith.constant 0 : i32
    %c0_i32_0 = arith.constant 0 : i32
    %c0_i32_1 = arith.constant 0 : i32
    return %c0_i32, %c0_i32_0 : i32, i32
  }
  func.func @transform_5(%arg0: i32, %arg1: i32) -> (i32, i32) {
    %c0_i32 = arith.constant 0 : i32
    %c0_i32_0 = arith.constant 0 : i32
    %c0_i32_1 = arith.constant 0 : i32
    return %c0_i32, %c0_i32_0 : i32, i32
  }
  func.func @transform_6(%arg0: i32, %arg1: i32) -> (i32, i32) {
    %c0_i32 = arith.constant 0 : i32
    %c0_i32_0 = arith.constant 0 : i32
    %c0_i32_1 = arith.constant 0 : i32
    return %c0_i32, %c0_i32_0 : i32, i32
  }
  func.func @transform_7(%arg0: i32, %arg1: i32) -> i32 {
    %c0_i32 = arith.constant 0 : i32
    %c0_i32_0 = arith.constant 0 : i32
    return %c0_i32 : i32
  }
  func.func @transform_8(%arg0: i32, %arg1: i32) -> (i32, i32, i32) {
    %c0_i32 = arith.constant 0 : i32
    %c0_i32_0 = arith.constant 0 : i32
    return %arg0, %c0_i32, %arg1 : i32, i32, i32
  }
}

</mosaic_0001>

<bundles_post_ra>
// kernel: tpu_custom_call.1
= control target key start
LH: loop header
LB: loop body
LE: loop exit
PB: predicated region body
PF: predicated region fallthrough
CT: control target
= control target key end

     0   :  { %s1057_s0 = inlined_call_operand.vmem [shape: f32[2,4,256], index: 0, kind: input, shape index: {}]   ;;  %s1058_s1 = inlined_call_operand.vmem [shape: f32[2,4,256], index: 1, kind: input, shape index: {}]   ;;  %s1059_s2 = inlined_call_operand.vmem [shape: f32[8,4], index: 2, kind: input, shape index: {}]   ;;  %s1060_s3 = inlined_call_operand.vmem [shape: f32[8,1], index: 3, kind: input, shape index: {}]   ;;  %s1061_s4 = inlined_call_operand.vmem [shape: f32[8,4], index: 4, kind: input, shape index: {}]   ;;  %s1062_s5 = inlined_call_operand.vmem [shape: f32[8,1], index: 5, kind: input, shape index: {}]   ;;  %s1063_s6 = inlined_call_operand.vmem [shape: f32[8,1], index: 6, kind: input, shape index: {}]   ;;  %s1064_s7 = inlined_call_operand.<no memory space> [shape: f32[1], index: 7, kind: input, shape index: {}]   ;;  %s1065_s8 = inlined_call_operand.hbm [shape: f32[2,4,256], index: 8, kind: output, shape index: {}]  }
   0x1   :  { %13 = sst [smem:[#allocation2]] %s1064_s7 }
   0x2   :  { %14 = vsyncpa [#allocation4], 0 }
   0x3   :  { %16 = vsyncpa [#allocation4 + $0x1], 0  ;;  %s922_s29 = smov 0   ;;  %s924_s30 = smov 0  }
   0x4   :  { %s926_s9 = smov 0   ;;  %s928_s10 = smov 0  }
   0x5   :  { %s930_s11 = smov 0   ;;  %s932_s12 = smov 0  }
   0x6 LB: > { %s688_s7 = sadd.s32 4294967295, %s868_s12   ;;  %s689_s13 = sadd.s32 4294967294, %s868_s12   ;;  %s868_s12 = sphi %s932_s12, %s22_s12   ;;  %s864_s11 = sphi %s930_s11, %s1074_s11   ;;  %s860_s10 = sphi %s928_s10, %s1073_s10   ;;  %s856_s9 = sphi %s926_s9, %s1072_s9   ;;  %s852_s30 = sphi %s924_s30, %s1071_s30   ;;  %s848_s29 = sphi %s922_s29, %s1070_s29  }
   0x7   : > { %s34_s14 = sadd.s32 1, %s864_s11  ;;  %s225_s15 = sadd.s32 1, %s856_s9 }
   0x8   : > { %p36_p0 = scmp.ge.s32.totalorder %s34_s14, 2  ;;  %p235_p1 = scmp.ne.s32.totalorder %s856_s9, %s852_s30 }
   0x9   : > { %p236_p2 = scmp.eq.s32.totalorder %s688_s7, 1  ;;  %p241_p3 = scmp.ne.s32.totalorder %s852_s30, %s848_s29 }
   0xa   : > { %s1076_s14 = smov (%p36_p0, %s34_s14), 0  ;;  %p242_p5 = scmp.eq.s32.totalorder %s689_s13, 1 }
   0xb   : > { %p962_p4 = por %p236_p2, %p235_p1  ;;  %s220_s17 = ssub.s32 %s864_s11, %s1076_s14 }
   0xc   : > { %p692_p6 = scmp.ge.s32.totalorder %s868_s12, 1  ;;  %p223_p7 = scmp.eq.s32.totalorder %s220_s17, 0 }
   0xd   : > { %p969_p8 = por %p242_p5, %p241_p3  ;;  %p304_p9 = scmp.lt.s32.totalorder %s868_s12, 3 }
   0xe   : > { %s975_s19 = scalar_select %p223_p7, %s856_s9, %s225_s15  }
   0xf   : > { %p305_p10 = pnand %p692_p6, %p304_p9 }
  0x10   : > { %p352_p11 = scmp.lt.s32.totalorder (!%p305_p10), %s860_s10, 1  ;;  %s524_s25 = sld [smem:[#allocation2]] (!%p305_p10) }
  0x11   : > { %308 = sbr.rel (%p305_p10) target bundleno = 219 (0xdb), region = 52  ;;  %s348_s26 = sand.u32 (!%p305_p10), 1, %s852_s30  }
  0x12   : > { %s1009_s27 = sshll.u32 (!%p305_p10), %s348_s26, 3  ;;  %s713_s28 = sshll.u32 (!%p305_p10), %s860_s10, 3 }
  0x16   : > { %v375_v0 = vld [vmem:[%s1059_s2] sm:$0xff]  ;;  %v870_v1 = vmov 1   ;;  %v871_v2 = vmov 0   ;;  %v872_v5 = vmov 3   ;;  %v873_v7 = vmov 2   ;;  %s353_s13 = scalar_select %p352_p11, %s860_s10, 1 }
  0x17   : > { %774 = vset.pattern.permute.xlu1 %v870_v1  ;;  %773 = vset.pattern.permute.xlu0 %v871_v2  ;;  %v372_v3 = vld [vmem:[%s1060_s3] sm:$0xff]  ;;  %vm570_vm7 = vcmask 1043456   ;;  %s350_s10 = scalar_lea.vmem [#allocation3], %s1009_s27  ;;  %s810_s27 = scalar_lea.hbm %s1065_s8, 16 }
  0x18   : > { %399 = vperm.xlu1 %774, %v375_v0   ;;  %379 = vperm.xlu0 %773, %v375_v0   ;;  %v373_v4 = vld [vmem:[%s1062_s5] sm:$0xff]  ;;  %s711_s15 = sshll.u32 %s353_s13, 3  ;;  %s591_s17 = sshll.u32 %s350_s10, 4  ;;  %s592_s17 = int_to_ptr.vmem [resolvable:$true] %s591_s17 }
  0x19   : > { %776 = vset.pattern.permute.xlu2 %v872_v5  ;;  %v374_v6 = vadd.f32 %v373_v4, %v372_v3  ;;  %v441_v8 = vld [vmem:[%s1061_s4] sm:$0xff]  ;;  %s359_s21 = scalar_lea.vmem %s1057_s0, %s711_s15  ;;  %s1000_s24 = scalar_lea.vmem %s1058_s1, %s711_s15 }
  0x1a   : > { %429 = vperm.xlu2 %776, %v375_v0   ;;  %v504_v9 = vld [vmem:[%s1063_s6] sm:$0xff]  ;;  %s589_s15 = scalar_lea.hbm %s1065_s8, %s713_s28 }
  0x1b   : > { %v376_v12 = vld [vmem:[%s359_s21] ss:$4 sm:$0x3]  ;;  %v698_v14 = vld [vmem:[%s359_s21 + $0x1] ss:$4 sm:$0x3] }
  0x1c   : > { %v383_v15 = vperm.slane %v376_v12, 0  ;;  %v384_v16 = vperm.slane %v376_v12, 1  ;;  %v699_v17 = vld [vmem:[%s359_s21 + $0x2] ss:$4 sm:$0x3]  ;;  %v403_v18 = vperm.slane %v698_v14, 0 }
  0x1d   : > { %v404_v19 = vperm.slane %v698_v14, 1  ;;  %v700_v20 = vld [vmem:[%s359_s21 + $0x3] ss:$4 sm:$0x3]  ;;  %v418_v21 = vperm.slane %v699_v17, 0  ;;  %v419_v22 = vperm.slane %v699_v17, 1 }
  0x1e   : > { %v442_v26 = vld [vmem:[%s1000_s24] ss:$4 sm:$0x3]  ;;  %v433_v27 = vperm.slane %v700_v20, 0  ;;  %v434_v28 = vperm.slane %v700_v20, 1  ;;  %s593_s20 = sshll.u32 %s589_s15, 4  ;;  %s594_s20 = int_to_ptr.hbm [resolvable:$true] %s593_s20 }
  0x1f   : > { %v449_v37 = vperm.slane %v442_v26, 0  ;;  %v450_v38 = vperm.slane %v442_v26, 1  ;;  %v701_v41 = vld [vmem:[%s1000_s24 + $0x1] ss:$4 sm:$0x3]  ;;  %v525_v26 = vstv %s524_s25  ;;  %s576_s21 = scalar_lea.sflag [#allocation4], %s348_s26 }
  0x20   : > { %775 = vset.pattern.permute.xlu1 %v873_v7  ;;  %391 = vperm.xlu0 %773, %v374_v6   ;;  %v703_v42 = vld [vmem:[%s1000_s24 + $0x3] ss:$4 sm:$0x3]  ;;  %v702_v47 = vld [vmem:[%s1000_s24 + $0x2] ss:$4 sm:$0x3] }
  0x21   : > { %414 = vperm.xlu1 %775, %v375_v0   ;;  %v464_v50 = vperm.slane %v701_v41, 0  ;;  %v465_v51 = vperm.slane %v701_v41, 1  ;;  %v494_v54 = vperm.slane %v703_v42, 0  ;;  %v495_v55 = vperm.slane %v703_v42, 1  ;;  %s804_s22 = sshra.s32 %s594_s20, 4  ;;  %s805_s22 = int_to_ptr.hbm [resolvable:$true] %s804_s22 }
  0x22   : > { %777 = vset.pattern.permute.xlu2 %v871_v2  ;;  %v479_v56 = vperm.slane %v702_v47, 0  ;;  %v480_v57 = vperm.slane %v702_v47, 1  ;;  %s806_s23 = scalar_lea.hbm %s805_s22, 8  ;;  %p811_p1 = scmp.lt.s32.totalorder %s805_s22, %s1065_s8 }
  0x23   : > { %445 = vperm.xlu2 %777, %v441_v8   ;;  %p807_p12 = scmp.ne.s32.totalorder %s805_s22, %s806_s23  ;;  %p812_p2 = scmp.lt.s32.totalorder %s810_s27, %s806_s23 }
  0x25   : > { %p808_p13 = pnand %p807_p12, %p962_p4  ;;  %p813_p3 = por %p812_p2, %p811_p1 }
  0x27   : > { %p809_p0 = pneg %p808_p13 }
  0x28   : > { %778 = vset.pattern.permute.xlu0 %v870_v1 }
  0x29   : > { %475 = vperm.xlu1 %775, %v441_v8   ;;  %460 = vperm.xlu0 %778, %v441_v8   ;;  %p814_p5 = pnand %p813_p3, %p809_p0 }
  0x2b   : > { %779 = vset.pattern.permute.xlu2 %v872_v5 }
  0x2c   : > { %490 = vperm.xlu2 %779, %v441_v8  }
  0x31   : > { %780 = vset.pattern.permute.xlu1 %v871_v2  ;;  %781 = vset.pattern.permute.xlu0 %v871_v2 }
  0x32   : > { %507 = vperm.xlu1 %780, %v504_v9  }
  0x74   : > { %v430_v10 = vpop.permute.xlu2 %429 }
  0x75   : > { %v437_v43 = vmul.f32 %v433_v27, %v430_v10  ;;  %v438_v44 = vmul.f32 %v434_v28, %v430_v10 }
  0x7d   : > { %v446_v23 = vpop.permute.xlu2 %445 }
  0x7e   : > { %v453_v48 = vmul.f32 %v449_v37, %v446_v23  ;;  %v454_v49 = vmul.f32 %v450_v38, %v446_v23 }
  0x86   : > { %v491_v58 = vpop.permute.xlu2 %490 }
  0x87   : > { %v498_v1 = vmul.f32 %v494_v54, %v491_v58  ;;  %v499_v2 = vmul.f32 %v495_v55, %v491_v58 }
  0x8a   : > { %v380_v11 = vpop.permute.xlu0 %379  ;;  %v400_v13 = vpop.permute.xlu1 %399 }
  0x8b   : > { %v387_v24 = vmul.f32 %v383_v15, %v380_v11  ;;  %v388_v25 = vmul.f32 %v384_v16, %v380_v11  ;;  %v407_v30 = vmul.f32 %v403_v18, %v400_v13  ;;  %v408_v31 = vmul.f32 %v404_v19, %v400_v13 }
  0x92   : > { %v392_v29 = vpop.permute.xlu0 %391 }
  0x93   : > { %v394_v32 = vadd.f32 %v392_v29, %v387_v24  ;;  %v395_v33 = vadd.f32 %v392_v29, %v388_v25  ;;  %v415_v34 = vpop.permute.xlu1 %414 }
  0x94   : > { %v422_v35 = vmul.f32 %v418_v21, %v415_v34  ;;  %v423_v36 = vmul.f32 %v419_v22, %v415_v34 }
  0x95   : > { %v409_v39 = vadd.f32 %v407_v30, %v394_v32  ;;  %v410_v40 = vadd.f32 %v408_v31, %v395_v33 }
  0x97   : > { %v424_v45 = vadd.f32 %v422_v35, %v409_v39  ;;  %v425_v46 = vadd.f32 %v423_v36, %v410_v40 }
  0x99   : > { %v439_v52 = vadd.f32 %v437_v43, %v424_v45  ;;  %v440_v53 = vadd.f32 %v438_v44, %v425_v46 }
  0x9b   : > { %v455_v59 = vadd.f32 %v453_v48, %v439_v52  ;;  %v456_v60 = vadd.f32 %v454_v49, %v440_v53  ;;  %v476_v61 = vpop.permute.xlu1 %475  ;;  %v461_v62 = vpop.permute.xlu0 %460 }
  0x9c   : > { %v468_v63 = vmul.f32 %v464_v50, %v461_v62  ;;  %v469_v0 = vmul.f32 %v465_v51, %v461_v62  ;;  %v483_v3 = vmul.f32 %v479_v56, %v476_v61  ;;  %v484_v4 = vmul.f32 %v480_v57, %v476_v61  ;;  %v566_v57 = vld [vmem:[%s1000_s24] sm:$0xff] }
  0x9e   : > { %v470_v5 = vadd.f32 %v468_v63, %v455_v59  ;;  %v471_v6 = vadd.f32 %v469_v0, %v456_v60 }
  0xa0   : > { %v485_v7 = vadd.f32 %v483_v3, %v470_v5  ;;  %v486_v8 = vadd.f32 %v484_v4, %v471_v6 }
  0xa2   : > { %v500_v9 = vadd.f32 %v498_v1, %v485_v7  ;;  %v501_v10 = vadd.f32 %v499_v2, %v486_v8 }
  0xa4   : > { %v508_v11 = vpop.permute.xlu1 %507  ;;  %v502_v12 = vmax.f32 %v500_v9, 0.0  ;;  %v503_v13 = vmax.f32 %v501_v10, 0.0 }
  0xa6   : > { %v510_v14 = vmul.f32 %v508_v11, %v502_v12  ;;  %v511_v15 = vmul.f32 %v508_v11, %v503_v13 }
  0xa8   : > { %v512_v16 = vrot.slane %v510_v14, 4  ;;  %v518_v17 = vrot.slane %v511_v15, 4 }
  0xaa   : > { %v513_v18 = vadd.f32 %v512_v16, %v510_v14  ;;  %v519_v19 = vadd.f32 %v518_v17, %v511_v15 }
  0xac   : > { %v514_v20 = vrot.slane %v513_v18, 2  ;;  %v520_v21 = vrot.slane %v519_v19, 2 }
  0xae   : > { %v515_v22 = vadd.f32 %v514_v20, %v513_v18  ;;  %v521_v23 = vadd.f32 %v520_v21, %v519_v19 }
  0xb0   : > { %v516_v24 = vrot.slane %v515_v22, 1  ;;  %v522_v25 = vrot.slane %v521_v23, 1 }
  0xb2   : > { %v517_v27 = vadd.f32 %v516_v24, %v515_v22  ;;  %v523_v28 = vadd.f32 %v522_v25, %v521_v23 }
  0xb4   : > { %v526_v29 = vadd.f32 %v525_v26, %v517_v27  ;;  %v527_v30 = vadd.f32 %v525_v26, %v523_v28 }
  0xb6   : > { %v704_v31 = vmul.f32 -1.442695, %v526_v29  ;;  %v705_v32 = vmul.f32 -1.442695, %v527_v30 }
  0xb8   : > { %782 = vpow2.f32 %v704_v31 }
  0xb9   : > { %784 = vpow2.f32 %v705_v32 }
  0xbe   : > { %v783_v33 = vpop.eup %782 }
  0xbf   : > { %v785_v34 = vpop.eup %784  ;;  %v534_v35 = vadd.f32 1.0, %v783_v33 }
  0xc0   : > { %v535_v36 = vadd.f32 1.0, %v785_v34 }
  0xc1   : > { %786 = vrcp.f32 %v534_v35  ;;  %vm541_vm2 = vweird.f32 %v534_v35  ;;  %v547_v48 = vand.u32 2147483648, %v534_v35  ;;  %v545_v50 = vand.u32 2147483647, %v534_v35 }
  0xc2   : > { %788 = vrcp.f32 %v535_v36  ;;  %v562_v44 = vand.u32 2147483648, %v535_v36  ;;  %v560_v46 = vand.u32 2147483647, %v535_v36  ;;  %vm556_vm4 = vweird.f32 %v535_v36 }
  0xc3   : > { %v548_v55 = vor.u32 1.1754944e-38, %v547_v48  ;;  %vm546_vm8 = vcmp.eq.f32.partialorder %v545_v50, 8.507059e+37 }
  0xc4   : > { %v563_v52 = vor.u32 1.1754944e-38, %v562_v44  ;;  %vm561_vm6 = vcmp.eq.f32.partialorder %v560_v46, 8.507059e+37 }
  0xc7   : > { %v787_v37 = vpop.eup %786 }
  0xc8   : > { %v789_v38 = vpop.eup %788  ;;  %v537_v39 = vmul.f32 %v787_v37, %v534_v35  ;;  %vm542_vm0 = vweird.f32 %v787_v37 }
  0xc9   : > { %v552_v40 = vmul.f32 %v789_v38, %v535_v36  ;;  %vm557_vm1 = vweird.f32 %v789_v38  ;;  %vm1012_vm3 = vmor %vm541_vm2, %vm542_vm0 }
  0xca   : > { %v538_v41 = vsub.f32 1.0, %v537_v39  ;;  %vm558_vm5 = vmor %vm556_vm4, %vm557_vm1 }
  0xcb   : > { %v553_v42 = vsub.f32 1.0, %v552_v40 }
  0xcc   : > { %v539_v43 = vmul.f32 %v787_v37, %v538_v41 }
  0xcd   : > { %v554_v45 = vmul.f32 %v789_v38, %v553_v42 }
  0xce   : > { %v540_v47 = vadd.f32 %v787_v37, %v539_v43 }
  0xcf   : > { %v555_v51 = vadd.f32 %v789_v38, %v554_v45 }
  0xd0   : > { %v544_v53 = vsel %vm1012_vm3, %v787_v37, %v540_v47 }
  0xd1   : > { %v559_v54 = vsel %vm558_vm5, %v789_v38, %v555_v51  ;;  %v549_v59 = vsel %vm546_vm8, %v548_v55, %v544_v53 }
  0xd2   : > { %v564_v56 = vsel %vm561_vm6, %v563_v52, %v559_v54 }
  0xd3   : > { %v569_v58 = vrot.slane %v564_v56, 4 }
  0xd5   : > { %v571_v60 = vsel %vm570_vm7, %v549_v59, %v569_v58 }
  0xd6   : > { %v573_v61 = vmul.f32 %v571_v60, %v566_v57 }
  0xd8   : > { %574 = vst [vmem:[%s350_s10] sm:$0xff] %v573_v61 }
  0xd9   : > { %817 = shalt.err (!%p814_p5)
}
  0xda   : > { %714 = dma.vmem_to_hbm [thread:$0]  (%p962_p4), %s592_s17, 128, %s594_s20, %s576_s21  }
  0xdb PF: > { %p720_p6 = scmp.ge.s32.totalorder %s868_s12, 2  ;;  %s605_s26 = sand.u32 1, %s848_s29  }
  0xdc   : > { %s606_s13 = scalar_lea.sflag [#allocation4], %s605_s26 }
  0xdd   : > { %p717_p7 = pnand %p720_p6, %p969_p8 }
  0xdf   : > { %p718_p9 = pneg %p717_p7 }
  0xe1   : > { %843 = dma.done.wait (%p718_p9), %s606_s13, 128  }
  0xe2   : > { %845 = vsyncadd (%p718_p9), %s606_s13, 4294967168  ;;  %s22_s12 = sadd.s32 1, %s868_s12   ;;  %s1070_s29 = smov %s852_s30 }
  0xe3   : > { %p19_p10 = scmp.ge.s32.totalorder %s22_s12, 4   ;;  %s1071_s30 = smov %s856_s9 }
  0xe4   : > { %s1072_s9 = smov %s975_s19  ;;  %s1073_s10 = smov %s864_s11 }
  0xe5   : > { %s1074_s11 = smov %s1076_s14  ;;  %21 = sbr.rel (!%p19_p10) target bundleno = 6 (0x6), region = 96 }
  0xea   :  { %612 = vsyncpa [#allocation4], 1 }
  0xeb   :  { %614 = vsyncpa [#allocation4 + $0x1], 1 }

</bundles_post_ra>
